<compile_context>
chip_gen: v7x
topology: tpu7x:2x2x1
jax: 0.10.0
libtpu: 0.0.40
codegen_flags: <defaults>
</compile_context>

<pallas_src>
import functools

import jax
import jax.numpy as jnp
from jax.experimental import pallas as pl
from jax.experimental.pallas import tpu as pltpu

IN_FEATURES = 3
OUT_FEATURES = 16

# Batch rows folded into one lane-dense packed row:
# a (B, 16) f32 row-major array is bit-identical to a (B/GROUP, GROUP*16) array.
GROUP = 32
PACK_IN = GROUP * IN_FEATURES      # 96  input lanes per packed row
PACK_OUT = GROUP * OUT_FEATURES    # 512 output lanes per packed row
TILE_UNIT = GROUP * 8              # 256 rows: keeps the block's sublane dim a multiple of 8


def _round_up(n, m):
    return -(-n // m) * m


def linear_silu_kernel(xg_ref, m_ref, b_ref, o_ref):
    # xg_ref: (tg, 96)  = 32 packed input rows per sublane row  (x.reshape(B/32, 96) block)
    # m_ref : (96, 512) = kron(I_32, W) block-diagonal weights  (VMEM resident)
    # b_ref : (1, 512)  = bias tiled 32x                        (VMEM resident)
    # o_ref : (tg, 512) = bit-identical view of a (32*tg, 16) row-major output slab
    #
    # One small MXU matmul does the Linear layer AND the (rows, features) -> lane packing, so
    # the store below is a dense, unmasked (tg, 512) write.
    z = jnp.dot(xg_ref[...], m_ref[...], preferred_element_type=jnp.float32) + b_ref[...]
    # NOTE: for bit-strict f32 accuracy on arbitrary inputs, add
    #       precision=jax.lax.Precision.HIGHEST to the jnp.dot above.
    # SiLU: z * sigmoid(z) == h + h*tanh(h) with h = z/2  (1 EUP op + 3 VALU ops).
    h = 0.5 * z
    o_ref[...] = (h * jnp.tanh(h) + h).astype(o_ref.dtype)


def _plan_tiles(batch, block_rows):
    """Pick (padded batch, rows per grid step, number of grid steps)."""
    b_min = _round_up(max(batch, 1), TILE_UNIT)
    tile = max(TILE_UNIT, min(_round_up(block_rows, TILE_UNIT), b_min))
    nsteps = -(-b_min // tile)
    # v7x has 2 TensorCores: give the "parallel" batch grid >= 2 steps when there is work.
    if nsteps == 1 and b_min >= 2 * TILE_UNIT:
        nsteps = 2
    tile = _round_up(-(-b_min // nsteps), TILE_UNIT)   # balance tiles -> padding stays small
    return nsteps * tile, tile, nsteps


@functools.partial(jax.jit, static_argnames=("block_rows",))
def sequential_forward(x, w, b, *, block_rows=65536):
    """x: (B, 3) f32, w: (3, 16) f32 (= torch weight^T), b: (16,) f32 -> (B, 16) f32."""
    batch = x.shape[0]
    b_pad, tile, nsteps = _plan_tiles(batch, block_rows)
    tg = tile // GROUP

    if b_pad != batch:                         # skip the pad entirely when already aligned
        x = jnp.pad(x, ((0, b_pad - batch), (0, 0)))

    # Free (bitcast) reshape: (b_pad, 3) row-major == (b_pad/32, 96) row-major.
    xg = x.reshape(b_pad // GROUP, PACK_IN)
    # Block-diagonal weights fold the 32-row packing into the contraction itself.
    m_mat = jnp.kron(jnp.eye(GROUP, dtype=w.dtype), w)        # (96, 512)
    bias_row = jnp.tile(b, (GROUP,)).reshape(1, PACK_OUT)     # (1, 512)

    # Double-buffered VMEM need (xg block is lane-padded 96 -> 128) + resident weights/bias.
    vmem_need = 2 * (tg * 128 + tg * PACK_OUT) * 4 + 2 * (PACK_IN * PACK_OUT + PACK_OUT) * 4
    vmem_limit = int(min(max(2 * vmem_need, 32 * 1024 * 1024), 64 * 1024 * 1024))

    out2d = pl.pallas_call(
        linear_silu_kernel,
        out_shape=jax.ShapeDtypeStruct((b_pad // GROUP, PACK_OUT), x.dtype),
        grid_spec=pltpu.PrefetchScalarGridSpec(
            num_scalar_prefetch=0,
            grid=(nsteps,),
            in_specs=[
                pl.BlockSpec((tg, PACK_IN), lambda i: (i, 0)),
                # Weights / bias: constant block index -> fetched once, stay VMEM resident.
                pl.BlockSpec((PACK_IN, PACK_OUT), lambda i: (0, 0)),
                pl.BlockSpec((1, PACK_OUT), lambda i: (0, 0)),
            ],
            out_specs=pl.BlockSpec((tg, PACK_OUT), lambda i: (i, 0)),
        ),
        compiler_params=pltpu.CompilerParams(
            dimension_semantics=("parallel",),      # independent batch tiles (megacore/2-TC)
            vmem_limit_bytes=vmem_limit,
        ),
        cost_estimate=pl.CostEstimate(
            flops=b_pad * OUT_FEATURES * (2 * IN_FEATURES + 4),
            transcendentals=b_pad * OUT_FEATURES,
            bytes_accessed=b_pad * 4 * (IN_FEATURES + OUT_FEATURES),
        ),
    )(xg, m_mat, bias_row)

    # Free bitcast back to PyTorch's (B, 16) layout; slice only if we actually padded.
    out = out2d.reshape(b_pad, OUT_FEATURES)
    if b_pad != batch:
        out = out[:batch]
    return out


if __name__ == "__main__":
    key = jax.random.PRNGKey(0)
    kx, kw, kb = jax.random.split(key, 3)

    # nn.Linear(3, 16)-style init, stored as (IN, OUT) = W^T.  Parameters and inputs are
    # rounded to bf16-representable f32 values so the correctness check is independent of the
    # MXU's internal f32-matmul precision mode (the implementation itself stays f32).
    bound = 1.0 / (IN_FEATURES ** 0.5)
    w = jax.random.uniform(kw, (IN_FEATURES, OUT_FEATURES), minval=-bound, maxval=bound,
                           dtype=jnp.float32).astype(jnp.bfloat16).astype(jnp.float32)
    b = jax.random.uniform(kb, (OUT_FEATURES,), minval=-bound, maxval=bound,
                           dtype=jnp.float32).astype(jnp.bfloat16).astype(jnp.float32)

    def reference(xs):
        # Exact f32 reference (elementwise MACs avoid any XLA dot-precision ambiguity).
        z = xs[:, 0:1] * w[0] + xs[:, 1:2] * w[1] + xs[:, 2:3] * w[2] + b
        return z * jax.nn.sigmoid(z)

    # Batched input that is NOT a multiple of the 256-row tile unit, so the pad,
    # tile-balancing, multi-step "parallel" grid and final-slice paths are all exercised.
    B = 300
    x = jax.random.normal(kx, (B, IN_FEATURES), dtype=jnp.float32)
    x = x.astype(jnp.bfloat16).astype(jnp.float32)
    out = jax.block_until_ready(sequential_forward(x, w, b))
    assert out.shape == (B, OUT_FEATURES)
    assert jnp.allclose(out, reference(x), atol=1e-5, rtol=1e-5)

    # The literal module input shape (1, 3) also works (single small tile).
    x1 = jax.random.normal(kx, (1, IN_FEATURES), dtype=jnp.float32)
    x1 = x1.astype(jnp.bfloat16).astype(jnp.float32)
    out1 = jax.block_until_ready(sequential_forward(x1, w, b))
    assert out1.shape == (1, OUT_FEATURES)
    assert jnp.allclose(out1, reference(x1), atol=1e-5, rtol=1e-5)

    print("KERNEL_OK")
</pallas_src>

<mosaic_0001>
module attributes {stable_mosaic.version = 11 : i64} {
  func.func @linear_silu_kernel(%arg0: i32, %arg1: memref<8x96xf32, #tpu.memory_space<vmem>>, %arg2: memref<96x512xf32, #tpu.memory_space<vmem>>, %arg3: memref<1x512xf32, #tpu.memory_space<vmem>>, %arg4: memref<8x512xf32, #tpu.memory_space<vmem>>) attributes {dimension_semantics = [#tpu.dimension_semantics<parallel>], iteration_bounds = array<i64: 2>, scalar_prefetch = 0 : i64, scratch_operands = 0 : i64, tpu.core_type = #tpu.core_type<tc>, window_params = [{transform_indices = @transform_0, window_bounds = array<i64: 8, 96>}, {pipeline_mode = #tpu.pipeline_mode<synchronous>, transform_indices = @transform_1, window_bounds = array<i64: 96, 512>}, {pipeline_mode = #tpu.pipeline_mode<synchronous>, transform_indices = @transform_2, window_bounds = array<i64: 1, 512>}, {transform_indices = @transform_3, window_bounds = array<i64: 8, 512>}]} {
    %c0 = arith.constant 0 : index
    %c0_0 = arith.constant 0 : index
    %0 = vector.load %arg1[%c0, %c0_0] : memref<8x96xf32, #tpu.memory_space<vmem>>, vector<8x96xf32>
    %c0_1 = arith.constant 0 : index
    %c0_2 = arith.constant 0 : index
    %1 = vector.load %arg2[%c0_1, %c0_2] : memref<96x512xf32, #tpu.memory_space<vmem>>, vector<96x512xf32>
    %cst = arith.constant dense<0.000000e+00> : vector<8x512xf32>
    %2 = tpu.matmul %0, %1, %cst {dimension_numbers = #tpu.dot_dimension_numbers<[1], [0], [0], [1], [0, 0, 1, 1], [], []>} : vector<8x96xf32>, vector<96x512xf32>, vector<8x512xf32> -> vector<8x512xf32>
    %c0_3 = arith.constant 0 : index
    %c0_4 = arith.constant 0 : index
    %3 = vector.load %arg3[%c0_3, %c0_4] : memref<1x512xf32, #tpu.memory_space<vmem>>, vector<1x512xf32>
    %4 = vector.broadcast %3 : vector<1x512xf32> to vector<8x512xf32>
    %5 = arith.addf %2, %4 : vector<8x512xf32>
    %cst_5 = arith.constant 5.000000e-01 : f32
    %6 = vector.broadcast %cst_5 : f32 to vector<8x512xf32>
    %7 = arith.mulf %6, %5 : vector<8x512xf32>
    %8 = math.tanh %7 : vector<8x512xf32>
    %9 = arith.mulf %7, %8 : vector<8x512xf32>
    %10 = arith.addf %9, %7 : vector<8x512xf32>
    %c0_6 = arith.constant 0 : index
    %c0_7 = arith.constant 0 : index
    %11 = vector.load %arg4[%c0_6, %c0_7] : memref<8x512xf32, #tpu.memory_space<vmem>>, vector<8x512xf32>
    tpu.vector_store %arg4[%c0_6, %c0_7], %10 {strides = array<i32>} : memref<8x512xf32, #tpu.memory_space<vmem>>, vector<8x512xf32>,
    return
  }
  func.func @transform_0(%arg0: i32) -> (i32, i32) {
    %c0_i32 = arith.constant 0 : i32
    %c0_i32_0 = arith.constant 0 : i32
    return %arg0, %c0_i32 : i32, i32
  }
  func.func @transform_1(%arg0: i32) -> (i32, i32) {
    %c0_i32 = arith.constant 0 : i32
    %c0_i32_0 = arith.constant 0 : i32
    %c0_i32_1 = arith.constant 0 : i32
    return %c0_i32, %c0_i32_0 : i32, i32
  }
  func.func @transform_2(%arg0: i32) -> (i32, i32) {
    %c0_i32 = arith.constant 0 : i32
    %c0_i32_0 = arith.constant 0 : i32
    %c0_i32_1 = arith.constant 0 : i32
    return %c0_i32, %c0_i32_0 : i32, i32
  }
  func.func @transform_3(%arg0: i32) -> (i32, i32) {
    %c0_i32 = arith.constant 0 : i32
    %c0_i32_0 = arith.constant 0 : i32
    return %arg0, %c0_i32 : i32, i32
  }
}

</mosaic_0001>

<bundles_post_ra>
// kernel: tile.8
= control target key start
LH: loop header
LB: loop body
LE: loop exit
PB: predicated region body
PF: predicated region fallthrough
CT: control target
= control target key end

     0   :  { %s40_s0 = inlined_call_operand.vmem [shape: f32[16], index: 0, kind: input, shape index: {}]   ;;  %s41_s1 = inlined_call_operand.vmem [shape: f32[32,16], index: 1, kind: output, shape index: {}]  }
   0x1   :  { %v4_v0 = vld [vmem:[%s40_s0] ss:$0 sm:$0xff] }
   0x2   :  { %5 = vst [vmem:[%s41_s1] sm:$0xff] %v4_v0  ;;  %12 = vst [vmem:[%s41_s1 + $0x8] sm:$0xff] %v4_v0 }
   0x3   :  { %13 = vst [vmem:[%s41_s1 + $0x10] sm:$0xff] %v4_v0  ;;  %14 = vst [vmem:[%s41_s1 + $0x18] sm:$0xff] %v4_v0 }

// kernel: tile.9
= control target key start
LH: loop header
LB: loop body
LE: loop exit
PB: predicated region body
PF: predicated region fallthrough
CT: control target
= control target key end

     0   :  { %s89_s8 = smov 112   ;;  %s90_s11 = smov 80   ;;  %vm3_vm0 = vcmask 130048   ;;  %vm9_vm1 = vcmask 1048448   ;;  %vm15_vm2 = vcmask 917248   ;;  %vm21_vm3 = vcmask 786048   ;;  %s142_s0 = inlined_call_operand.vmem [shape: f32[32,16], index: 0, kind: input, shape index: {}]   ;;  %s143_s1 = inlined_call_operand.vmem [shape: f32[1,512], index: 1, kind: output, shape index: {}]  }
   0x1   :  { %v72_v0 = vld [vmem:[%s142_s0 + $0x7] ss:$8 sm:$0xf]   ;;  %v74_v1 = vld [vmem:[%s142_s0 + $0x5] ss:$8 sm:$0xf]  }
   0x2   :  { %7 = vrot.lane.b32.xlu0 %v72_v0, %s89_s8  ;;  %19 = vrot.lane.b32.xlu1 %v74_v1, %s90_s11  ;;  %v73_v2 = vld [vmem:[%s142_s0 + $0x6] ss:$8 sm:$0xf]   ;;  %v75_v3 = vld [vmem:[%s142_s0 + $0x4] ss:$8 sm:$0xf]  }
   0x3   :  { %s91_s16 = smov 96   ;;  %v2_v4 = vld [vmem:[%s142_s0] ss:$8 sm:$0xf]   ;;  %s92_s19 = smov 64   ;;  %vm27_vm4 = vcmask 654848  }
   0x4   :  { %v76_v5 = vld [vmem:[%s142_s0 + $0x3] ss:$8 sm:$0xf]   ;;  %4 = vst.msk [vmem:[#allocation0] ss:$8 sm:$0xf] %vm3_vm0, %v2_v4  }
   0x5   :  { %v77_v6 = vld [vmem:[%s142_s0 + $0x2] ss:$8 sm:$0xf]   ;;  %s93_s24 = smov 48   ;;  %s94_s25 = smov 32   ;;  %vm33_vm5 = vcmask 523648  }
   0x6   :  { %13 = vrot.lane.b32.xlu0 %v73_v2, %s91_s16  ;;  %25 = vrot.lane.b32.xlu1 %v75_v3, %s92_s19  ;;  %v78_v7 = vld [vmem:[%s142_s0 + $0x1] ss:$8 sm:$0xf]   ;;  %s95_s0 = smov 16   ;;  %vm39_vm6 = vcmask 392448   ;;  %vm45_vm7 = vcmask 261248  }
   0xa   :  { %31 = vrot.lane.b32.xlu0 %v76_v5, %s93_s24  ;;  %37 = vrot.lane.b32.xlu1 %v77_v6, %s94_s25 }
   0xe   :  { %43 = vrot.lane.b32.xlu0 %v78_v7, %s95_s0 }
  0x74   :  { %v8_v8 = vpop.permute.xlu0 %7   ;;  %v20_v9 = vpop.permute.xlu1 %19  }
  0x75   :  { %10 = vst.msk [vmem:[#allocation0] ss:$8 sm:$0xf] %vm9_vm1, %v8_v8  }
  0x78   :  { %v14_v10 = vpop.permute.xlu0 %13   ;;  %v26_v11 = vpop.permute.xlu1 %25  }
  0x79   :  { %16 = vst.msk [vmem:[#allocation0] ss:$8 sm:$0xf] %vm15_vm2, %v14_v10  }
  0x7a   :  { %22 = vst.msk [vmem:[#allocation0] ss:$8 sm:$0xf] %vm21_vm3, %v20_v9  }
  0x7b   :  { %28 = vst.msk [vmem:[#allocation0] ss:$8 sm:$0xf] %vm27_vm4, %v26_v11  }
  0x7c   :  { %v32_v12 = vpop.permute.xlu0 %31   ;;  %v38_v13 = vpop.permute.xlu1 %37  }
  0x7d   :  { %34 = vst.msk [vmem:[#allocation0] ss:$8 sm:$0xf] %vm33_vm5, %v32_v12  }
  0x7e   :  { %40 = vst.msk [vmem:[#allocation0] ss:$8 sm:$0xf] %vm39_vm6, %v38_v13  }
  0x80   :  { %v44_v14 = vpop.permute.xlu0 %43  }
  0x81   :  { %46 = vst.msk [vmem:[#allocation0] ss:$8 sm:$0xf] %vm45_vm7, %v44_v14  }
  0x88   :  { %v50_v15 = vld [vmem:[#allocation0] sm:$0x1]  ;;  %v54_v16 = vld [vmem:[#allocation0 + $0x8] sm:$0x1]  ;;  %v59_v17 = vld [vmem:[#allocation0 + $0x10] sm:$0x1] }
  0x89   :  { %52 = vst [vmem:[%s143_s1] sm:$0x1] %v50_v15  ;;  %79 = vst [vmem:[%s143_s1 + $0x1] sm:$0x1] %v54_v16  ;;  %v65_v18 = vld [vmem:[#allocation0 + $0x18] sm:$0x1] }
  0x8a   :  { %80 = vst [vmem:[%s143_s1 + $0x2] sm:$0x1] %v59_v17  ;;  %81 = vst [vmem:[%s143_s1 + $0x3] sm:$0x1] %v65_v18 }

// kernel: sequential_forward.1
= control target key start
LH: loop header
LB: loop body
LE: loop exit
PB: predicated region body
PF: predicated region fallthrough
CT: control target
= control target key end

     0   :  { %s567_s12 = smov 0   ;;  %s745_s0 = inlined_call_operand.vmem [shape: f32[16,96], index: 0, kind: input, shape index: {}]   ;;  %s746_s1 = inlined_call_operand.vmem [shape: f32[96,512], index: 1, kind: input, shape index: {}]   ;;  %s747_s2 = inlined_call_operand.vmem [shape: f32[1,512], index: 2, kind: input, shape index: {}]   ;;  %s748_s3 = inlined_call_operand.vmem [shape: f32[16,512], index: 3, kind: output, shape index: {}]  }
   0x1 LB: > { %s460_s13 = sadd.s32 4294967295, %s544_s12   ;;  %p464_p0 = scmp.ge.s32.totalorder %s544_s12, 1  ;;  %s544_s12 = sphi %s567_s12, %s13_s12  }
   0x2   : > { %p136_p1 = scmp.lt.s32.totalorder %s544_s12, 3 }
   0x4   : > { %p137_p2 = pnand %p464_p0, %p136_p1 }
   0x5   : > { %v170_v0 = vld [vmem:[%s746_s1 + $0x8] sm:$0xff] (!%p137_p2)  ;;  %v172_v2 = vld [vmem:[%s746_s1 + $0x18] sm:$0xff] (!%p137_p2)  ;;  %v169_v5 = vld [vmem:[%s746_s1] sm:$0xff] (!%p137_p2)  ;;  %v546_v7 = vmov (!%p137_p2), 0.0   ;;  %p676_p3 = scmp.lt.s32.totalorder (!%p137_p2), %s460_s13, 1  ;;  %vm239_vm0 = vcmask (!%p137_p2), 785408  }
   0x6   : > { %140 = sbr.rel (%p137_p2) target bundleno = 268 (0x10c), region = 32  ;;  %v174_v1 = vld [vmem:[%s746_s1 + $0x28] sm:$0xff] (!%p137_p2)  ;;  %v176_v4 = vld [vmem:[%s746_s1 + $0x38] sm:$0xff] (!%p137_p2)  ;;  %v173_v6 = vld [vmem:[%s746_s1 + $0x20] sm:$0xff] (!%p137_p2)  ;;  %307 = vmatprep.mubr.f32.mxu0 (!%p137_p2), %v546_v7  ;;  %378 = vmatprep.mubr.f32.mxu1 (!%p137_p2), %v546_v7 }
   0x7   : > { %v473_v3 = vpack.c.bf16 (!%p137_p2), %v174_v1, %v170_v0  ;;  %v497_v8 = vpack.c.bf16 (!%p137_p2), %v176_v4, %v172_v2  ;;  %v475_v9 = vpack.c.bf16 (!%p137_p2), %v173_v6, %v169_v5  ;;  %v171_v10 = vld [vmem:[%s746_s1 + $0x10] sm:$0xff] (!%p137_p2)  ;;  %v178_v12 = vld [vmem:[%s746_s1 + $0x48] sm:$0xff] (!%p137_p2)  ;;  %v180_v15 = vld [vmem:[%s746_s1 + $0x58] sm:$0xff] (!%p137_p2) }
   0x8   : > { %v175_v11 = vld [vmem:[%s746_s1 + $0x30] sm:$0xff] (!%p137_p2)  ;;  %v182_v14 = vld [vmem:[%s746_s1 + $0x68] sm:$0xff] (!%p137_p2)  ;;  %v184_v16 = vld [vmem:[%s746_s1 + $0x78] sm:$0xff] (!%p137_p2) }
   0x9   : > { %474 = vmatprep.subr.bf16.mxu0 (!%p137_p2), %v473_v3  ;;  %v499_v13 = vpack.c.bf16 (!%p137_p2), %v175_v11, %v171_v10  ;;  %498 = vmatprep.subr.bf16.mxu1 (!%p137_p2), %v497_v8  ;;  %v477_v17 = vpack.c.bf16 (!%p137_p2), %v182_v14, %v178_v12  ;;  %v501_v18 = vpack.c.bf16 (!%p137_p2), %v184_v16, %v180_v15  ;;  %v177_v19 = vld [vmem:[%s746_s1 + $0x40] sm:$0xff] (!%p137_p2)  ;;  %v179_v21 = vld [vmem:[%s746_s1 + $0x50] sm:$0xff] (!%p137_p2)  ;;  %v186_v24 = vld [vmem:[%s746_s1 + $0x88] sm:$0xff] (!%p137_p2)  ;;  %v219_v10 = vlaneseq (!%p137_p2) }
   0xa   : > { %476 = vmatpush1.bf16.msra.mxu0 (!%p137_p2), %v475_v9  ;;  %v181_v20 = vld [vmem:[%s746_s1 + $0x60] sm:$0xff] (!%p137_p2)  ;;  %v183_v23 = vld [vmem:[%s746_s1 + $0x70] sm:$0xff] (!%p137_p2)  ;;  %v190_v25 = vld [vmem:[%s746_s1 + $0xa8] sm:$0xff] (!%p137_p2) }
   0xb   : > { %500 = vmatpush1.bf16.msra.mxu1 (!%p137_p2), %v499_v13  ;;  %v479_v22 = vpack.c.bf16 (!%p137_p2), %v181_v20, %v177_v19  ;;  %478 = vmatprep.subr.bf16.mxu0 (!%p137_p2), %v477_v17  ;;  %v503_v26 = vpack.c.bf16 (!%p137_p2), %v183_v23, %v179_v21  ;;  %v481_v27 = vpack.c.bf16 (!%p137_p2), %v190_v25, %v186_v24  ;;  %v188_v28 = vld [vmem:[%s746_s1 + $0x98] sm:$0xff] (!%p137_p2)  ;;  %v185_v30 = vld [vmem:[%s746_s1 + $0x80] sm:$0xff] (!%p137_p2)  ;;  %v187_v33 = vld [vmem:[%s746_s1 + $0x90] sm:$0xff] (!%p137_p2)  ;;  %v220_v11 = vshrl.u32 (!%p137_p2), %v219_v10, 7 }
   0xc   : > { %502 = vmatprep.subr.bf16.mxu1 (!%p137_p2), %v501_v18  ;;  %v192_v29 = vld [vmem:[%s746_s1 + $0xb8] sm:$0xff] (!%p137_p2)  ;;  %v189_v32 = vld [vmem:[%s746_s1 + $0xa0] sm:$0xff] (!%p137_p2)  ;;  %v191_v34 = vld [vmem:[%s746_s1 + $0xb0] sm:$0xff] (!%p137_p2) }
   0xd   : > { %v505_v31 = vpack.c.bf16 %v192_v29, %v188_v28  ;;  %v483_v35 = vpack.c.bf16 %v189_v32, %v185_v30  ;;  %v194_v36 = vld [vmem:[%s746_s1 + $0xc8] sm:$0xff]  ;;  %v196_v38 = vld [vmem:[%s746_s1 + $0xd8] sm:$0xff]  ;;  %v507_v39 = vpack.c.bf16 %v191_v34, %v187_v33  ;;  %v193_v42 = vld [vmem:[%s746_s1 + $0xc0] sm:$0xff]  ;;  %s751_s13 = smov (!%p676_p3, %s460_s13), 1  ;;  %v221_v12 = vsub.s32 0, %v220_v11 }
   0xe   : > { %480 = vmatpush1.bf16.msra.mxu0 %v479_v22  ;;  %v198_v37 = vld [vmem:[%s746_s1 + $0xe8] sm:$0xff]  ;;  %v200_v41 = vld [vmem:[%s746_s1 + $0xf8] sm:$0xff]  ;;  %v197_v43 = vld [vmem:[%s746_s1 + $0xe0] sm:$0xff]  ;;  %s465_s9 = sshll.u32 %s751_s13, 3  ;;  %v229_v14 = vsub.s32 2, %v220_v11  ;;  %v225_v15 = vsub.s32 1, %v220_v11 }
   0xf   : > { %504 = vmatpush1.bf16.msra.mxu1 %v503_v26  ;;  %482 = vmatprep.subr.bf16.mxu0 %v481_v27  ;;  %v485_v40 = vpack.c.bf16 %v198_v37, %v194_v36  ;;  %v509_v44 = vpack.c.bf16 %v200_v41, %v196_v38  ;;  %v195_v45 = vld [vmem:[%s746_s1 + $0xd0] sm:$0xff]  ;;  %v202_v47 = vld [vmem:[%s746_s1 + $0x108] sm:$0xff]  ;;  %v204_v49 = vld [vmem:[%s746_s1 + $0x118] sm:$0xff]  ;;  %v487_v51 = vpack.c.bf16 %v197_v43, %v193_v42  ;;  %s162_s14 = scalar_lea.vmem %s745_s0, %s465_s9  ;;  %v233_v16 = vsub.s32 3, %v220_v11  ;;  %s472_s17 = sshll.u32 %s751_s13, 5 }
  0x10   : > { %506 = vmatprep.subr.bf16.mxu1 %v505_v31  ;;  %v199_v46 = vld [vmem:[%s746_s1 + $0xf0] sm:$0xff]  ;;  %v206_v48 = vld [vmem:[%s746_s1 + $0x128] sm:$0xff]  ;;  %v208_v50 = vld [vmem:[%s746_s1 + $0x138] sm:$0xff]  ;;  %s167_s20 = scalar_lea.vmem %s748_s3, %s472_s17 }
  0x11   : > { %v511_v52 = vpack.c.bf16 %v199_v46, %v195_v45  ;;  %v489_v53 = vpack.c.bf16 %v206_v48, %v202_v47  ;;  %v201_v54 = vld [vmem:[%s746_s1 + $0x100] sm:$0xff]  ;;  %v203_v56 = vld [vmem:[%s746_s1 + $0x110] sm:$0xff]  ;;  %v513_v57 = vpack.c.bf16 %v208_v50, %v204_v49  ;;  %v210_v59 = vld [vmem:[%s746_s1 + $0x148] sm:$0xff] }
  0x12   : > { %484 = vmatpush1.bf16.msra.mxu0 %v483_v35  ;;  %v205_v55 = vld [vmem:[%s746_s1 + $0x120] sm:$0xff]  ;;  %v207_v58 = vld [vmem:[%s746_s1 + $0x130] sm:$0xff]  ;;  %v214_v60 = vld [vmem:[%s746_s1 + $0x168] sm:$0xff] }
  0x13   : > { %508 = vmatpush1.bf16.msra.mxu1 %v507_v39  ;;  %486 = vmatprep.subr.bf16.mxu0 %v485_v40  ;;  %v212_v61 = vld [vmem:[%s746_s1 + $0x158] sm:$0xff]  ;;  %v491_v63 = vpack.c.bf16 %v205_v55, %v201_v54  ;;  %v515_v0 = vpack.c.bf16 %v207_v58, %v203_v56  ;;  %v493_v1 = vpack.c.bf16 %v214_v60, %v210_v59  ;;  %v209_v2 = vld [vmem:[%s746_s1 + $0x140] sm:$0xff]  ;;  %v211_v5 = vld [vmem:[%s746_s1 + $0x150] sm:$0xff] }
  0x14   : > { %510 = vmatprep.subr.bf16.mxu1 %v509_v44  ;;  %v216_v62 = vld [vmem:[%s746_s1 + $0x178] sm:$0xff]  ;;  %v213_v3 = vld [vmem:[%s746_s1 + $0x160] sm:$0xff]  ;;  %v215_v6 = vld [vmem:[%s746_s1 + $0x170] sm:$0xff] }
  0x15   : > { %v517_v4 = vpack.c.bf16 %v216_v62, %v212_v61  ;;  %v495_v7 = vpack.c.bf16 %v213_v3, %v209_v2  ;;  %v519_v8 = vpack.c.bf16 %v215_v6, %v211_v5  ;;  %v168_v9 = vld [vmem:[%s162_s14] sm:$0xff] }
  0x16   : > { %488 = vmatpush1.bf16.msra.mxu0 %v487_v51  ;;  %v217_v13 = vld [vmem:[%s747_s2] sm:$0xf] }
  0x17   : > { %512 = vmatpush1.bf16.msra.mxu1 %v511_v52  ;;  %490 = vmatprep.subr.bf16.mxu0 %v489_v53  ;;  %v222_v17 = vrot.slane %v217_v13, %v221_v12  ;;  %v230_v18 = vrot.slane %v217_v13, %v229_v14  ;;  %v226_v19 = vrot.slane %v217_v13, %v225_v15 }
  0x18   : > { %514 = vmatprep.subr.bf16.mxu1 %v513_v57  ;;  %v234_v20 = vrot.slane %v217_v13, %v233_v16 }
  0x1a   : > { %492 = vmatpush1.bf16.msra.mxu0 %v491_v63 }
  0x1b   : > { %516 = vmatpush1.bf16.msra.mxu1 %v515_v0  ;;  %494 = vmatprep.subr.bf16.mxu0 %v493_v1 }
  0x1c   : > { %518 = vmatprep.subr.bf16.mxu1 %v517_v4 }
  0x1e   : > { %496 = vmatpush1.bf16.msra.mxu0 %v495_v7 }
  0x1f   : > { %520 = vmatpush1.bf16.msra.mxu1 %v519_v8 }
  0x21   : > { %468 = vmatmul.mubr.msk.f32.vlgmr.msra.gmra.mrb[0].mxu0 %vm239_vm0, %v168_v9 }
  0x22   : > { %469 = vmatmul.mubr.msk.f32.vlgmr.msra.gmra.mrb[0].mxu1 %vm239_vm0, %v168_v9 }
  0xf4   : > { %v309_v21 = vpop.f32.mrb[0].mxu0 }
  0xf5   : > { %v310_v22 = vadd.f32 %v309_v21, %v222_v17  ;;  %v380_v23 = vpop.f32.mrb[0].mxu1  ;;  %v311_v24 = vpop.f32.mrb[1].mxu0 }
  0xf6   : > { %v381_v25 = vadd.f32 %v380_v23, %v230_v18  ;;  %v312_v26 = vadd.f32 %v311_v24, %v226_v19  ;;  %v382_v27 = vpop.f32.mrb[1].mxu1 }
  0xf7   : > { %v385_v28 = vmul.f32 0.5, %v310_v22  ;;  %v383_v29 = vadd.f32 %v382_v27, %v234_v20 }
  0xf8   : > { %v387_v30 = vmul.f32 0.5, %v381_v25  ;;  %v386_v31 = vmul.f32 0.5, %v312_v26 }
  0xf9   : > { %530 = vtanh.f32 %v385_v28  ;;  %v388_v32 = vmul.f32 0.5, %v383_v29 }
  0xfa   : > { %532 = vtanh.f32 %v387_v30 }
  0xfb   : > { %534 = vtanh.f32 %v386_v31 }
  0xfc   : > { %536 = vtanh.f32 %v388_v32 }
 0x103   : > { %v531_v33 = vpop.eup %530 }
 0x104   : > { %v533_v34 = vpop.eup %532  ;;  %v393_v35 = vmul.f32 %v531_v33, %v385_v28 }
 0x105   : > { %v535_v36 = vpop.eup %534  ;;  %v395_v37 = vmul.f32 %v533_v34, %v387_v30 }
 0x106   : > { %v537_v38 = vpop.eup %536  ;;  %v397_v39 = vadd.f32 %v393_v35, %v385_v28  ;;  %v394_v40 = vmul.f32 %v535_v36, %v386_v31 }
 0x107   : > { %v399_v41 = vadd.f32 %v395_v37, %v387_v30  ;;  %v396_v42 = vmul.f32 %v537_v38, %v388_v32 }
 0x108   : > { %401 = vst [vmem:[%s167_s20] sm:$0xff] %v397_v39  ;;  %v398_v43 = vadd.f32 %v394_v40, %v386_v31 }
 0x109   : > { %403 = vst [vmem:[%s167_s20 + $0x10] sm:$0xff] %v399_v41  ;;  %v400_v44 = vadd.f32 %v396_v42, %v388_v32 }
 0x10a   : > { %402 = vst [vmem:[%s167_s20 + $0x8] sm:$0xff] %v398_v43 }
 0x10b   : > { %404 = vst [vmem:[%s167_s20 + $0x18] sm:$0xff] %v400_v44 }
 0x10c PF: > { %s13_s12 = sadd.s32 1, %s544_s12  }
 0x10d   : > { %p10_p4 = scmp.ge.s32.totalorder %s13_s12, 4  }
 0x10f   :  { %12 = sbr.rel (!%p10_p4) target bundleno = 1 (0x1), region = 62 }

</bundles_post_ra>
